<compile_context>
chip_gen: v7x
topology: tpu7x:2x2x1
jax: 0.10.0
libtpu: 0.0.40
codegen_flags: <defaults>
</compile_context>

<pallas_src>
import functools

import jax
import jax.numpy as jnp
from jax.experimental import pallas as pl
from jax.experimental.pallas import tpu as pltpu


def _lif_encode_kernel(x_ref, out_ref, v_ref, b_ref, *, t_block, alpha, beta,
                       v_leak, v_th, v_reset):
    """Produce one (t_block, tile_rows, 128) block of the spike train.

    grid = (row_tiles, num_t_blocks); time is the inner "arbitrary" axis.
    v (membrane voltage) and b (constant drive) live in VMEM scratch and are
    carried across time blocks; both are (re)initialized at time-block 0 of
    every row tile.
    """
    @pl.when(pl.program_id(1) == 0)
    def _init():
        x = x_ref[...].astype(jnp.float32)
        b_ref[...] = beta * (v_leak + x)            # hoisted constant drive
        v_ref[...] = jnp.zeros_like(v_ref)

    b = b_ref[...]
    v = v_ref[...]
    for tt in range(t_block):                        # short static unroll
        # Algebraically identical to  v += dt*tau*((v_leak - v) + x)
        v = alpha * v + b
        z = v > v_th                                 # spike (strict >, norse heaviside)
        # TODO(synk): norse surrogate treats v == v_th via heaviside; strict > used here.
        v = jnp.where(z, jnp.float32(v_reset), v)    # reset where spiked
        out_ref[tt] = z.astype(out_ref.dtype)
    v_ref[...] = v


def if_constant_current_encode(x, seq_length, tau_mem_inv=1.0 / 0.01,
                               v_th=1.0, v_reset=0.0, v_leak=0.0, dt=0.001,
                               out_dtype=jnp.float32,
                               max_tile_rows=1024, max_t_block=8, lanes=128):
    """JAX/Pallas equivalent of IFConstantCurrentEncoder.forward(x).

    out_dtype: spikes are exactly 0/1, so bf16 (or int8) can be used to cut
    HBM writeback 2-4x; float32 default matches the PyTorch module.
    """
    orig_shape = x.shape
    flat = x.reshape(-1).astype(jnp.float32)
    n = flat.shape[0]

    # ---- layout: lane-dense (rows, 128), rows a multiple of 8 (sublane) ----
    rows = -(-n // lanes)
    rows = -(-rows // 8) * 8
    if rows <= max_tile_rows:
        tile_rows = rows
    else:
        tile_rows = max_tile_rows
        rows = -(-rows // tile_rows) * tile_rows
    padded_n = rows * lanes
    if padded_n != n:
        flat = jnp.pad(flat, (0, padded_n - n))
    x2d = flat.reshape(rows, lanes)

    # ---- time blocking: largest divisor of seq_length that is <= max_t_block
    t_block = 1
    for d in range(min(seq_length, max_t_block), 0, -1):
        if seq_length % d == 0:
            t_block = d
            break
    num_t_blocks = seq_length // t_block

    beta = dt * tau_mem_inv
    alpha = 1.0 - beta

    kernel = functools.partial(
        _lif_encode_kernel, t_block=t_block, alpha=alpha, beta=beta,
        v_leak=v_leak, v_th=v_th, v_reset=v_reset)

    # ---- explicit scoped-VMEM budget: 2x(in + out blocks) + scratch + headroom
    out_itemsize = jnp.dtype(out_dtype).itemsize
    in_block_bytes = tile_rows * lanes * 4
    out_block_bytes = t_block * tile_rows * lanes * out_itemsize
    scratch_bytes = 2 * tile_rows * lanes * 4
    vmem_limit = int(2 * (in_block_bytes + out_block_bytes) + scratch_bytes
                     + (4 << 20))
    vmem_limit = max(16 << 20, min(vmem_limit, 64 << 20))

    out = pl.pallas_call(
        kernel,
        out_shape=jax.ShapeDtypeStruct((seq_length, rows, lanes), out_dtype),
        grid_spec=pltpu.PrefetchScalarGridSpec(
            num_scalar_prefetch=0,
            grid=(rows // tile_rows, num_t_blocks),
            in_specs=[
                # same block index for all t -> input tile stays resident
                pl.BlockSpec((tile_rows, lanes), lambda i, tb: (i, 0)),
            ],
            out_specs=pl.BlockSpec((t_block, tile_rows, lanes),
                                   lambda i, tb: (tb, i, 0)),
            scratch_shapes=[
                pltpu.VMEM((tile_rows, lanes), jnp.float32),  # v (voltage)
                pltpu.VMEM((tile_rows, lanes), jnp.float32),  # b (drive)
            ],
        ),
        compiler_params=pltpu.CompilerParams(
            dimension_semantics=("parallel", "arbitrary"),
            vmem_limit_bytes=vmem_limit),
    )(x2d)

    out = out.reshape(seq_length, padded_n)
    if padded_n != n:
        out = out[:, :n]
    return out.reshape((seq_length,) + tuple(orig_shape))


def _reference_encode(x, seq_length, tau_mem_inv=100.0, v_th=1.0,
                      v_reset=0.0, v_leak=0.0, dt=0.001):
    """Pure-JAX reference for norse's constant-current LIF encoding.

    Uses the algebraically identical update v = (1 - dt*tau)*v + dt*tau*(v_leak+x)
    (same formulation as the kernel, differs from the literal norse loop only
    by float-rounding order).
    """
    x = x.astype(jnp.float32)
    beta = dt * tau_mem_inv
    alpha = 1.0 - beta
    b = beta * (v_leak + x)
    v = jnp.zeros_like(x)
    spikes = []
    for _ in range(seq_length):
        v = alpha * v + b
        z = v > v_th
        v = jnp.where(z, jnp.float32(v_reset), v)
        spikes.append(z.astype(jnp.float32))
    return jnp.stack(spikes)


if __name__ == "__main__":
    # Module config (defaults of IFConstantCurrentEncoder) + small shapes.
    seq_length = 8
    tau_mem_inv = 1.0 / 0.01
    v_th = 1.0
    v_reset = 0.0
    dt = 0.001

    key = jax.random.PRNGKey(0)
    # x is the constant input current; scale so some neurons actually spike.
    x = jax.random.uniform(key, (2, 4, 16, 16), dtype=jnp.float32) * 4.0

    spikes = if_constant_current_encode(
        x, seq_length, tau_mem_inv=tau_mem_inv, v_th=v_th,
        v_reset=v_reset, dt=dt)
    spikes = jax.block_until_ready(spikes)

    ref = _reference_encode(x, seq_length, tau_mem_inv, v_th, v_reset, 0.0, dt)
    assert spikes.shape == (seq_length,) + x.shape, spikes.shape
    assert spikes.dtype == jnp.float32
    assert jnp.array_equal(spikes, ref), "mismatch vs. pure-JAX reference"

    # Second check: exercises multi-row-tile grid, multi-time-block grid and
    # the padded (non-multiple-of-128) path with tiny data.
    x2 = jax.random.uniform(jax.random.PRNGKey(1), (5, 7, 9, 11),
                            dtype=jnp.float32) * 4.0
    s2 = if_constant_current_encode(
        x2, 6, tau_mem_inv=tau_mem_inv, v_th=v_th, v_reset=v_reset, dt=dt,
        max_tile_rows=8, max_t_block=4)
    s2 = jax.block_until_ready(s2)
    r2 = _reference_encode(x2, 6, tau_mem_inv, v_th, v_reset, 0.0, dt)
    assert s2.shape == (6,) + x2.shape
    assert jnp.array_equal(s2, r2), "mismatch on padded / multi-tile path"

    print("KERNEL_OK")
</pallas_src>

<mosaic_0001>
module attributes {stable_mosaic.version = 11 : i64} {
  func.func @_lif_encode_kernel(%arg0: i32, %arg1: i32, %arg2: memref<16x128xf32, #tpu.memory_space<vmem>>, %arg3: memref<8x16x128xf32, #tpu.memory_space<vmem>>, %arg4: memref<16x128xf32, #tpu.memory_space<vmem>>, %arg5: memref<16x128xf32, #tpu.memory_space<vmem>>) attributes {dimension_semantics = [#tpu.dimension_semantics<parallel>, #tpu.dimension_semantics<arbitrary>], iteration_bounds = array<i64: 1, 1>, scalar_prefetch = 0 : i64, scratch_operands = 2 : i64, tpu.core_type = #tpu.core_type<tc>, window_params = [{transform_indices = @transform_0, window_bounds = array<i64: 16, 128>}, {transform_indices = @transform_1, window_bounds = array<i64: 8, 16, 128>}]} {
    %c0_i32 = arith.constant 0 : i32
    %0 = arith.cmpi eq, %arg1, %c0_i32 : i32
    %1 = arith.extui %0 : i1 to i32
    %c0_i32_0 = arith.constant 0 : i32
    %2 = arith.cmpi ne, %1, %c0_i32_0 : i32
    scf.if %2 {
      %c0_46 = arith.constant 0 : index
      %c0_47 = arith.constant 0 : index
      %102 = vector.load %arg2[%c0_46, %c0_47] : memref<16x128xf32, #tpu.memory_space<vmem>>, vector<16x128xf32>
      %cst_48 = arith.constant 0.000000e+00 : f32
      %103 = vector.broadcast %cst_48 : f32 to vector<16x128xf32>
      %104 = arith.addf %103, %102 : vector<16x128xf32>
      %cst_49 = arith.constant 1.000000e-01 : f32
      %105 = vector.broadcast %cst_49 : f32 to vector<16x128xf32>
      %106 = arith.mulf %105, %104 : vector<16x128xf32>
      %c0_50 = arith.constant 0 : index
      %c0_51 = arith.constant 0 : index
      %107 = vector.load %arg5[%c0_50, %c0_51] : memref<16x128xf32, #tpu.memory_space<vmem>>, vector<16x128xf32>
      tpu.vector_store %arg5[%c0_50, %c0_51], %106 {strides = array<i32>} : memref<16x128xf32, #tpu.memory_space<vmem>>, vector<16x128xf32>,
      %cst_52 = arith.constant 0.000000e+00 : f32
      %108 = vector.broadcast %cst_52 : f32 to vector<16x128xf32>
      %c0_53 = arith.constant 0 : index
      %c0_54 = arith.constant 0 : index
      %109 = vector.load %arg4[%c0_53, %c0_54] : memref<16x128xf32, #tpu.memory_space<vmem>>, vector<16x128xf32>
      tpu.vector_store %arg4[%c0_53, %c0_54], %108 {strides = array<i32>} : memref<16x128xf32, #tpu.memory_space<vmem>>, vector<16x128xf32>,
    } else {
    }
    %c0 = arith.constant 0 : index
    %c0_1 = arith.constant 0 : index
    %3 = vector.load %arg5[%c0, %c0_1] : memref<16x128xf32, #tpu.memory_space<vmem>>, vector<16x128xf32>
    %c0_2 = arith.constant 0 : index
    %c0_3 = arith.constant 0 : index
    %4 = vector.load %arg4[%c0_2, %c0_3] : memref<16x128xf32, #tpu.memory_space<vmem>>, vector<16x128xf32>
    %cst = arith.constant 0.899999976 : f32
    %5 = vector.broadcast %cst : f32 to vector<16x128xf32>
    %6 = arith.mulf %5, %4 : vector<16x128xf32>
    %7 = arith.addf %6, %3 : vector<16x128xf32>
    %cst_4 = arith.constant 1.000000e+00 : f32
    %8 = vector.broadcast %cst_4 : f32 to vector<16x128xf32>
    %9 = arith.cmpf ogt, %7, %8 : vector<16x128xf32>
    %cst_5 = arith.constant 0.000000e+00 : f32
    %10 = vector.broadcast %cst_5 : f32 to vector<16x128xf32>
    %11 = arith.select %9, %10, %7 : vector<16x128xi1>, vector<16x128xf32>
    %12 = arith.extui %9 : vector<16x128xi1> to vector<16x128xi32>
    %13 = arith.sitofp %12 : vector<16x128xi32> to vector<16x128xf32>
    %c0_6 = arith.constant 0 : index
    %c0_7 = arith.constant 0 : index
    %c0_8 = arith.constant 0 : index
    %14 = vector.load %arg3[%c0_6, %c0_7, %c0_8] : memref<8x16x128xf32, #tpu.memory_space<vmem>>, vector<1x16x128xf32>
    %15 = vector.shape_cast %14 : vector<1x16x128xf32> to vector<16x128xf32>
    %16 = vector.shape_cast %13 : vector<16x128xf32> to vector<1x16x128xf32>
    tpu.vector_store %arg3[%c0_6, %c0_7, %c0_8], %16 {strides = array<i32>} : memref<8x16x128xf32, #tpu.memory_space<vmem>>, vector<1x16x128xf32>,
    %cst_9 = arith.constant 0.899999976 : f32
    %17 = vector.broadcast %cst_9 : f32 to vector<16x128xf32>
    %18 = arith.mulf %17, %11 : vector<16x128xf32>
    %19 = arith.addf %18, %3 : vector<16x128xf32>
    %cst_10 = arith.constant 1.000000e+00 : f32
    %20 = vector.broadcast %cst_10 : f32 to vector<16x128xf32>
    %21 = arith.cmpf ogt, %19, %20 : vector<16x128xf32>
    %cst_11 = arith.constant 0.000000e+00 : f32
    %22 = vector.broadcast %cst_11 : f32 to vector<16x128xf32>
    %23 = arith.select %21, %22, %19 : vector<16x128xi1>, vector<16x128xf32>
    %24 = arith.extui %21 : vector<16x128xi1> to vector<16x128xi32>
    %25 = arith.sitofp %24 : vector<16x128xi32> to vector<16x128xf32>
    %c1 = arith.constant 1 : index
    %c0_12 = arith.constant 0 : index
    %c0_13 = arith.constant 0 : index
    %26 = vector.load %arg3[%c1, %c0_12, %c0_13] : memref<8x16x128xf32, #tpu.memory_space<vmem>>, vector<1x16x128xf32>
    %27 = vector.shape_cast %26 : vector<1x16x128xf32> to vector<16x128xf32>
    %28 = vector.shape_cast %25 : vector<16x128xf32> to vector<1x16x128xf32>
    tpu.vector_store %arg3[%c1, %c0_12, %c0_13], %28 {strides = array<i32>} : memref<8x16x128xf32, #tpu.memory_space<vmem>>, vector<1x16x128xf32>,
    %cst_14 = arith.constant 0.899999976 : f32
    %29 = vector.broadcast %cst_14 : f32 to vector<16x128xf32>
    %30 = arith.mulf %29, %23 : vector<16x128xf32>
    %31 = arith.addf %30, %3 : vector<16x128xf32>
    %cst_15 = arith.constant 1.000000e+00 : f32
    %32 = vector.broadcast %cst_15 : f32 to vector<16x128xf32>
    %33 = arith.cmpf ogt, %31, %32 : vector<16x128xf32>
    %cst_16 = arith.constant 0.000000e+00 : f32
    %34 = vector.broadcast %cst_16 : f32 to vector<16x128xf32>
    %35 = arith.select %33, %34, %31 : vector<16x128xi1>, vector<16x128xf32>
    %36 = arith.extui %33 : vector<16x128xi1> to vector<16x128xi32>
    %37 = arith.sitofp %36 : vector<16x128xi32> to vector<16x128xf32>
    %c2 = arith.constant 2 : index
    %c0_17 = arith.constant 0 : index
    %c0_18 = arith.constant 0 : index
    %38 = vector.load %arg3[%c2, %c0_17, %c0_18] : memref<8x16x128xf32, #tpu.memory_space<vmem>>, vector<1x16x128xf32>
    %39 = vector.shape_cast %38 : vector<1x16x128xf32> to vector<16x128xf32>
    %40 = vector.shape_cast %37 : vector<16x128xf32> to vector<1x16x128xf32>
    tpu.vector_store %arg3[%c2, %c0_17, %c0_18], %40 {strides = array<i32>} : memref<8x16x128xf32, #tpu.memory_space<vmem>>, vector<1x16x128xf32>,
    %cst_19 = arith.constant 0.899999976 : f32
    %41 = vector.broadcast %cst_19 : f32 to vector<16x128xf32>
    %42 = arith.mulf %41, %35 : vector<16x128xf32>
    %43 = arith.addf %42, %3 : vector<16x128xf32>
    %cst_20 = arith.constant 1.000000e+00 : f32
    %44 = vector.broadcast %cst_20 : f32 to vector<16x128xf32>
    %45 = arith.cmpf ogt, %43, %44 : vector<16x128xf32>
    %cst_21 = arith.constant 0.000000e+00 : f32
    %46 = vector.broadcast %cst_21 : f32 to vector<16x128xf32>
    %47 = arith.select %45, %46, %43 : vector<16x128xi1>, vector<16x128xf32>
    %48 = arith.extui %45 : vector<16x128xi1> to vector<16x128xi32>
    %49 = arith.sitofp %48 : vector<16x128xi32> to vector<16x128xf32>
    %c3 = arith.constant 3 : index
    %c0_22 = arith.constant 0 : index
    %c0_23 = arith.constant 0 : index
    %50 = vector.load %arg3[%c3, %c0_22, %c0_23] : memref<8x16x128xf32, #tpu.memory_space<vmem>>, vector<1x16x128xf32>
    %51 = vector.shape_cast %50 : vector<1x16x128xf32> to vector<16x128xf32>
    %52 = vector.shape_cast %49 : vector<16x128xf32> to vector<1x16x128xf32>
    tpu.vector_store %arg3[%c3, %c0_22, %c0_23], %52 {strides = array<i32>} : memref<8x16x128xf32, #tpu.memory_space<vmem>>, vector<1x16x128xf32>,
    %cst_24 = arith.constant 0.899999976 : f32
    %53 = vector.broadcast %cst_24 : f32 to vector<16x128xf32>
    %54 = arith.mulf %53, %47 : vector<16x128xf32>
    %55 = arith.addf %54, %3 : vector<16x128xf32>
    %cst_25 = arith.constant 1.000000e+00 : f32
    %56 = vector.broadcast %cst_25 : f32 to vector<16x128xf32>
    %57 = arith.cmpf ogt, %55, %56 : vector<16x128xf32>
    %cst_26 = arith.constant 0.000000e+00 : f32
    %58 = vector.broadcast %cst_26 : f32 to vector<16x128xf32>
    %59 = arith.select %57, %58, %55 : vector<16x128xi1>, vector<16x128xf32>
    %60 = arith.extui %57 : vector<16x128xi1> to vector<16x128xi32>
    %61 = arith.sitofp %60 : vector<16x128xi32> to vector<16x128xf32>
    %c4 = arith.constant 4 : index
    %c0_27 = arith.constant 0 : index
    %c0_28 = arith.constant 0 : index
    %62 = vector.load %arg3[%c4, %c0_27, %c0_28] : memref<8x16x128xf32, #tpu.memory_space<vmem>>, vector<1x16x128xf32>
    %63 = vector.shape_cast %62 : vector<1x16x128xf32> to vector<16x128xf32>
    %64 = vector.shape_cast %61 : vector<16x128xf32> to vector<1x16x128xf32>
    tpu.vector_store %arg3[%c4, %c0_27, %c0_28], %64 {strides = array<i32>} : memref<8x16x128xf32, #tpu.memory_space<vmem>>, vector<1x16x128xf32>,
    %cst_29 = arith.constant 0.899999976 : f32
    %65 = vector.broadcast %cst_29 : f32 to vector<16x128xf32>
    %66 = arith.mulf %65, %59 : vector<16x128xf32>
    %67 = arith.addf %66, %3 : vector<16x128xf32>
    %cst_30 = arith.constant 1.000000e+00 : f32
    %68 = vector.broadcast %cst_30 : f32 to vector<16x128xf32>
    %69 = arith.cmpf ogt, %67, %68 : vector<16x128xf32>
    %cst_31 = arith.constant 0.000000e+00 : f32
    %70 = vector.broadcast %cst_31 : f32 to vector<16x128xf32>
    %71 = arith.select %69, %70, %67 : vector<16x128xi1>, vector<16x128xf32>
    %72 = arith.extui %69 : vector<16x128xi1> to vector<16x128xi32>
    %73 = arith.sitofp %72 : vector<16x128xi32> to vector<16x128xf32>
    %c5 = arith.constant 5 : index
    %c0_32 = arith.constant 0 : index
    %c0_33 = arith.constant 0 : index
    %74 = vector.load %arg3[%c5, %c0_32, %c0_33] : memref<8x16x128xf32, #tpu.memory_space<vmem>>, vector<1x16x128xf32>
    %75 = vector.shape_cast %74 : vector<1x16x128xf32> to vector<16x128xf32>
    %76 = vector.shape_cast %73 : vector<16x128xf32> to vector<1x16x128xf32>
    tpu.vector_store %arg3[%c5, %c0_32, %c0_33], %76 {strides = array<i32>} : memref<8x16x128xf32, #tpu.memory_space<vmem>>, vector<1x16x128xf32>,
    %cst_34 = arith.constant 0.899999976 : f32
    %77 = vector.broadcast %cst_34 : f32 to vector<16x128xf32>
    %78 = arith.mulf %77, %71 : vector<16x128xf32>
    %79 = arith.addf %78, %3 : vector<16x128xf32>
    %cst_35 = arith.constant 1.000000e+00 : f32
    %80 = vector.broadcast %cst_35 : f32 to vector<16x128xf32>
    %81 = arith.cmpf ogt, %79, %80 : vector<16x128xf32>
    %cst_36 = arith.constant 0.000000e+00 : f32
    %82 = vector.broadcast %cst_36 : f32 to vector<16x128xf32>
    %83 = arith.select %81, %82, %79 : vector<16x128xi1>, vector<16x128xf32>
    %84 = arith.extui %81 : vector<16x128xi1> to vector<16x128xi32>
    %85 = arith.sitofp %84 : vector<16x128xi32> to vector<16x128xf32>
    %c6 = arith.constant 6 : index
    %c0_37 = arith.constant 0 : index
    %c0_38 = arith.constant 0 : index
    %86 = vector.load %arg3[%c6, %c0_37, %c0_38] : memref<8x16x128xf32, #tpu.memory_space<vmem>>, vector<1x16x128xf32>
    %87 = vector.shape_cast %86 : vector<1x16x128xf32> to vector<16x128xf32>
    %88 = vector.shape_cast %85 : vector<16x128xf32> to vector<1x16x128xf32>
    tpu.vector_store %arg3[%c6, %c0_37, %c0_38], %88 {strides = array<i32>} : memref<8x16x128xf32, #tpu.memory_space<vmem>>, vector<1x16x128xf32>,
    %cst_39 = arith.constant 0.899999976 : f32
    %89 = vector.broadcast %cst_39 : f32 to vector<16x128xf32>
    %90 = arith.mulf %89, %83 : vector<16x128xf32>
    %91 = arith.addf %90, %3 : vector<16x128xf32>
    %cst_40 = arith.constant 1.000000e+00 : f32
    %92 = vector.broadcast %cst_40 : f32 to vector<16x128xf32>
    %93 = arith.cmpf ogt, %91, %92 : vector<16x128xf32>
    %cst_41 = arith.constant 0.000000e+00 : f32
    %94 = vector.broadcast %cst_41 : f32 to vector<16x128xf32>
    %95 = arith.select %93, %94, %91 : vector<16x128xi1>, vector<16x128xf32>
    %96 = arith.extui %93 : vector<16x128xi1> to vector<16x128xi32>
    %97 = arith.sitofp %96 : vector<16x128xi32> to vector<16x128xf32>
    %c7 = arith.constant 7 : index
    %c0_42 = arith.constant 0 : index
    %c0_43 = arith.constant 0 : index
    %98 = vector.load %arg3[%c7, %c0_42, %c0_43] : memref<8x16x128xf32, #tpu.memory_space<vmem>>, vector<1x16x128xf32>
    %99 = vector.shape_cast %98 : vector<1x16x128xf32> to vector<16x128xf32>
    %100 = vector.shape_cast %97 : vector<16x128xf32> to vector<1x16x128xf32>
    tpu.vector_store %arg3[%c7, %c0_42, %c0_43], %100 {strides = array<i32>} : memref<8x16x128xf32, #tpu.memory_space<vmem>>, vector<1x16x128xf32>,
    %c0_44 = arith.constant 0 : index
    %c0_45 = arith.constant 0 : index
    %101 = vector.load %arg4[%c0_44, %c0_45] : memref<16x128xf32, #tpu.memory_space<vmem>>, vector<16x128xf32>
    tpu.vector_store %arg4[%c0_44, %c0_45], %95 {strides = array<i32>} : memref<16x128xf32, #tpu.memory_space<vmem>>, vector<16x128xf32>,
    return
  }
  func.func @transform_0(%arg0: i32, %arg1: i32) -> (i32, i32) {
    %c0_i32 = arith.constant 0 : i32
    %c0_i32_0 = arith.constant 0 : i32
    return %arg0, %c0_i32 : i32, i32
  }
  func.func @transform_1(%arg0: i32, %arg1: i32) -> (i32, i32, i32) {
    %c0_i32 = arith.constant 0 : i32
    %c0_i32_0 = arith.constant 0 : i32
    return %arg1, %arg0, %c0_i32 : i32, i32, i32
  }
}

</mosaic_0001>

<bundles_post_ra>
// kernel: tpu_custom_call.1
= control target key start
LH: loop header
LB: loop body
LE: loop exit
PB: predicated region body
PF: predicated region fallthrough
CT: control target
= control target key end

     0   :  { %6 = vsyncpa [#allocation5], 0  ;;  %s331_s0 = inlined_call_operand.hbm [shape: f32[16,128], index: 0, kind: input, shape index: {}]   ;;  %s332_s1 = inlined_call_operand.hbm [shape: f32[8,16,128], index: 1, kind: output, shape index: {}]  }
   0x1   :  { %7 = vsyncpa [#allocation6], 0  ;;  %s248_s6 = smov [#allocation4]   ;;  %s200_s10 = scalar_lea.hbm %s331_s0, 256 }
   0x2   :  { %s13_s7 = sshll.u32 %s248_s6, 4  ;;  %p201_p0 = scmp.ne.s32.totalorder %s331_s0, %s200_s10  ;;  %s14_s7 = int_to_ptr.vmem [resolvable:$true] %s13_s7 }
   0x3   :  { %p204_p1 = scmp.lt.u32.totalorder %s200_s10, %s331_s0 }
   0x5   :  { %p206_p2 = pnand %p204_p1, %p201_p0 }
   0x7   :  { %209 = shalt.err (!%p206_p2)
}
   0x8   :  { %s210_s15 = scalar_lea.vmem %s14_s7, 256  ;;  %p215_p4 = scmp.lt.s32.totalorder %s14_s7, %s14_s7 }
   0x9   :  { %p211_p3 = scmp.ne.s32.totalorder %s14_s7, %s210_s15  ;;  %p216_p5 = scmp.lt.s32.totalorder %s210_s15, %s210_s15 }
   0xb   :  { %p217_p6 = por %p216_p5, %p215_p4 }
   0xd   :  { %p218_p7 = pnand %p217_p6, %p211_p3 }
   0xf   :  { %221 = shalt.err (!%p218_p7)
}
  0x10   :  { %s249_s16 = smov 128   ;;  %s250_s17 = smov 8  }
  0x11   :  { %19 = dma.hbm_to_vmem [thread:$0]  %s331_s0, 256, %s14_s7, [#allocation5], %s249_s16, %s249_s16, %s250_s17  }
  0x12   :  { %244 = dma.done.wait [#allocation5], 256  }
  0x13   :  { %245 = vsyncadd [#allocation5], 4294967040  ;;  %v27_v0 = vld [vmem:[#allocation4] sm:$0xff]  ;;  %v28_v1 = vld [vmem:[#allocation4 + $0x8] sm:$0xff]  ;;  %v251_v5 = vmov 0.0   ;;  %s252_s0 = smov [#allocation7]  }
  0x14   :  { %v278_v2 = vmul.f32 0.1, %v27_v0  ;;  %v280_v3 = vmul.f32 0.1, %v28_v1  ;;  %s167_s20 = sshll.u32 %s252_s0, 4  ;;  %s168_s20 = int_to_ptr.vmem [resolvable:$true] %s167_s20 }
  0x15   :  { %s222_s21 = scalar_lea.vmem %s168_s20, 2048  ;;  %p227_p9 = scmp.lt.s32.totalorder %s168_s20, %s168_s20 }
  0x16   :  { %vm45_vm0 = vcmp.gt.f32.partialorder %v278_v2, 1.0  ;;  %vm46_vm1 = vcmp.gt.f32.partialorder %v280_v3, 1.0  ;;  %p223_p8 = scmp.ne.s32.totalorder %s168_s20, %s222_s21  ;;  %p228_p10 = scmp.lt.s32.totalorder %s222_s21, %s222_s21 }
  0x17   :  { %v47_v4 = vsel %vm45_vm0, 0.0, %v278_v2  ;;  %v179_v6 = vsel %vm45_vm0, 1.0, %v251_v5  ;;  %v48_v7 = vsel %vm46_vm1, 0.0, %v280_v3  ;;  %v180_v8 = vsel %vm46_vm1, 1.0, %v251_v5 }
  0x18   :  { %53 = vst [vmem:[#allocation7] sm:$0xff] %v179_v6  ;;  %v55_v9 = vmul.f32 0.9, %v47_v4  ;;  %54 = vst [vmem:[#allocation7 + $0x8] sm:$0xff] %v180_v8  ;;  %v56_v10 = vmul.f32 0.9, %v48_v7  ;;  %p229_p11 = por %p228_p10, %p227_p9 }
  0x1a   :  { %v57_v11 = vadd.f32 %v55_v9, %v278_v2  ;;  %v58_v12 = vadd.f32 %v56_v10, %v280_v3  ;;  %p230_p12 = pnand %p229_p11, %p223_p8 }
  0x1c   :  { %vm59_vm2 = vcmp.gt.f32.partialorder %v57_v11, 1.0  ;;  %vm60_vm3 = vcmp.gt.f32.partialorder %v58_v12, 1.0 }
  0x1d   :  { %v61_v13 = vsel %vm59_vm2, 0.0, %v57_v11  ;;  %v181_v14 = vsel %vm59_vm2, 1.0, %v251_v5  ;;  %v62_v15 = vsel %vm60_vm3, 0.0, %v58_v12  ;;  %v182_v16 = vsel %vm60_vm3, 1.0, %v251_v5 }
  0x1e   :  { %68 = vst [vmem:[#allocation7 + $0x10] sm:$0xff] %v181_v14  ;;  %v70_v17 = vmul.f32 0.9, %v61_v13  ;;  %69 = vst [vmem:[#allocation7 + $0x18] sm:$0xff] %v182_v16  ;;  %v71_v18 = vmul.f32 0.9, %v62_v15 }
  0x20   :  { %v72_v19 = vadd.f32 %v70_v17, %v278_v2  ;;  %v73_v20 = vadd.f32 %v71_v18, %v280_v3 }
  0x22   :  { %vm74_vm4 = vcmp.gt.f32.partialorder %v72_v19, 1.0  ;;  %vm75_vm5 = vcmp.gt.f32.partialorder %v73_v20, 1.0 }
  0x23   :  { %v76_v21 = vsel %vm74_vm4, 0.0, %v72_v19  ;;  %v183_v22 = vsel %vm74_vm4, 1.0, %v251_v5  ;;  %v77_v23 = vsel %vm75_vm5, 0.0, %v73_v20  ;;  %v184_v24 = vsel %vm75_vm5, 1.0, %v251_v5 }
  0x24   :  { %83 = vst [vmem:[#allocation7 + $0x20] sm:$0xff] %v183_v22  ;;  %v85_v25 = vmul.f32 0.9, %v76_v21  ;;  %84 = vst [vmem:[#allocation7 + $0x28] sm:$0xff] %v184_v24  ;;  %v86_v26 = vmul.f32 0.9, %v77_v23 }
  0x26   :  { %v87_v27 = vadd.f32 %v85_v25, %v278_v2  ;;  %v88_v28 = vadd.f32 %v86_v26, %v280_v3 }
  0x28   :  { %vm89_vm6 = vcmp.gt.f32.partialorder %v87_v27, 1.0  ;;  %vm90_vm7 = vcmp.gt.f32.partialorder %v88_v28, 1.0 }
  0x29   :  { %v91_v29 = vsel %vm89_vm6, 0.0, %v87_v27  ;;  %v185_v30 = vsel %vm89_vm6, 1.0, %v251_v5  ;;  %v92_v31 = vsel %vm90_vm7, 0.0, %v88_v28  ;;  %v186_v32 = vsel %vm90_vm7, 1.0, %v251_v5 }
  0x2a   :  { %98 = vst [vmem:[#allocation7 + $0x30] sm:$0xff] %v185_v30  ;;  %v100_v33 = vmul.f32 0.9, %v91_v29  ;;  %99 = vst [vmem:[#allocation7 + $0x38] sm:$0xff] %v186_v32  ;;  %v101_v34 = vmul.f32 0.9, %v92_v31 }
  0x2c   :  { %v102_v35 = vadd.f32 %v100_v33, %v278_v2  ;;  %v103_v36 = vadd.f32 %v101_v34, %v280_v3 }
  0x2e   :  { %vm104_vm8 = vcmp.gt.f32.partialorder %v102_v35, 1.0  ;;  %vm105_vm9 = vcmp.gt.f32.partialorder %v103_v36, 1.0 }
  0x2f   :  { %v106_v37 = vsel %vm104_vm8, 0.0, %v102_v35  ;;  %v187_v38 = vsel %vm104_vm8, 1.0, %v251_v5  ;;  %v107_v39 = vsel %vm105_vm9, 0.0, %v103_v36  ;;  %v188_v40 = vsel %vm105_vm9, 1.0, %v251_v5 }
  0x30   :  { %113 = vst [vmem:[#allocation7 + $0x40] sm:$0xff] %v187_v38  ;;  %v115_v41 = vmul.f32 0.9, %v106_v37  ;;  %114 = vst [vmem:[#allocation7 + $0x48] sm:$0xff] %v188_v40  ;;  %v116_v42 = vmul.f32 0.9, %v107_v39 }
  0x32   :  { %v117_v43 = vadd.f32 %v115_v41, %v278_v2  ;;  %v118_v44 = vadd.f32 %v116_v42, %v280_v3 }
  0x34   :  { %vm119_vm10 = vcmp.gt.f32.partialorder %v117_v43, 1.0  ;;  %vm120_vm11 = vcmp.gt.f32.partialorder %v118_v44, 1.0 }
  0x35   :  { %v121_v45 = vsel %vm119_vm10, 0.0, %v117_v43  ;;  %v189_v46 = vsel %vm119_vm10, 1.0, %v251_v5  ;;  %v122_v47 = vsel %vm120_vm11, 0.0, %v118_v44  ;;  %v190_v48 = vsel %vm120_vm11, 1.0, %v251_v5 }
  0x36   :  { %128 = vst [vmem:[#allocation7 + $0x50] sm:$0xff] %v189_v46  ;;  %v130_v49 = vmul.f32 0.9, %v121_v45  ;;  %129 = vst [vmem:[#allocation7 + $0x58] sm:$0xff] %v190_v48  ;;  %v131_v50 = vmul.f32 0.9, %v122_v47 }
  0x38   :  { %v132_v51 = vadd.f32 %v130_v49, %v278_v2  ;;  %v133_v52 = vadd.f32 %v131_v50, %v280_v3 }
  0x3a   :  { %vm134_vm12 = vcmp.gt.f32.partialorder %v132_v51, 1.0  ;;  %vm135_vm13 = vcmp.gt.f32.partialorder %v133_v52, 1.0 }
  0x3b   :  { %v136_v53 = vsel %vm134_vm12, 0.0, %v132_v51  ;;  %v191_v54 = vsel %vm134_vm12, 1.0, %v251_v5  ;;  %v137_v55 = vsel %vm135_vm13, 0.0, %v133_v52  ;;  %v192_v56 = vsel %vm135_vm13, 1.0, %v251_v5 }
  0x3c   :  { %143 = vst [vmem:[#allocation7 + $0x60] sm:$0xff] %v191_v54  ;;  %v145_v57 = vmul.f32 0.9, %v136_v53  ;;  %144 = vst [vmem:[#allocation7 + $0x68] sm:$0xff] %v192_v56  ;;  %v146_v58 = vmul.f32 0.9, %v137_v55 }
  0x3e   :  { %v147_v59 = vadd.f32 %v145_v57, %v278_v2  ;;  %v148_v60 = vadd.f32 %v146_v58, %v280_v3 }
  0x40   :  { %vm149_vm14 = vcmp.gt.f32.partialorder %v147_v59, 1.0  ;;  %vm150_vm15 = vcmp.gt.f32.partialorder %v148_v60, 1.0 }
  0x41   :  { %v193_v61 = vsel %vm149_vm14, 1.0, %v251_v5  ;;  %v194_v62 = vsel %vm150_vm15, 1.0, %v251_v5 }
  0x42   :  { %158 = vst [vmem:[#allocation7 + $0x70] sm:$0xff] %v193_v61  ;;  %159 = vst [vmem:[#allocation7 + $0x78] sm:$0xff] %v194_v62 }
  0x43   :  { %233 = shalt.err (!%p230_p12)
}
  0x44   :  { %s234_s24 = scalar_lea.hbm %s332_s1, 2048 }
  0x45   :  { %p235_p13 = scmp.ne.s32.totalorder %s332_s1, %s234_s24  ;;  %p238_p0 = scmp.lt.u32.totalorder %s234_s24, %s332_s1 }
  0x47   :  { %p240_p1 = pnand %p238_p0, %p235_p13 }
  0x49   :  { %243 = shalt.err (!%p240_p1)
}
  0x4a   :  { %173 = dma.vmem_to_hbm [thread:$0]  %s168_s20, 2048, %s332_s1, [#allocation6], %s249_s16, %s249_s16, %s250_s17  }
  0x4b   :  { %246 = dma.done.wait [#allocation6], 2048  }
  0x4c   :  { %247 = vsyncadd [#allocation6], 4294965248 }
  0x4d   :  { %177 = vsyncpa [#allocation5], 1 }
  0x4e   :  { %178 = vsyncpa [#allocation6], 1 }

</bundles_post_ra>
